<compile_context>
chip_gen: v5e
topology: v5e:2x2
jax: 0.10.0
libtpu: 0.0.40
codegen_flags: <defaults>
</compile_context>

<pallas_src>
import math

import jax
import jax.numpy as jnp
from jax.experimental import pallas as pl
from jax.experimental.pallas import tpu as pltpu

d_k = d_v = 32
_SCALE = 1.0 / math.sqrt(d_k)


def _sdpa_kernel(q_ref, k_ref, v_ref, ctx_ref, attn_ref):
    # One (head-group, query-tile) grid step.
    #   q_ref:   [G, TQ, D]     k_ref / v_ref: [G, S, D]
    #   ctx_ref: [G, TQ, D]     attn_ref:      [G, TQ, S]
    q = q_ref[...] * _SCALE              # scale the small Q tile (VPU), keep dtype
    k = k_ref[...]                       # native (possibly bf16) dtype into the MXU
    v = v_ref[...]

    # scores = (Q / sqrt(d_k)) @ K^T : contract the last axes of both operands
    # so the "transpose" happens inside the MXU issue, not as an XLU transpose.
    scores = jnp.einsum("gqd,gkd->gqk", q, k,
                        preferred_element_type=jnp.float32)        # [G,TQ,S] f32

    # Numerically-stable softmax over the key axis (matches Softmax(dim=-1)).
    m = jnp.max(scores, axis=-1, keepdims=True)
    e = jnp.exp(scores - m)
    s = jnp.sum(e, axis=-1, keepdims=True)
    # Exact per-row reciprocal: only G*TQ ops (negligible next to G*TQ*S exps),
    # and the returned probabilities sum to 1 exactly (f32).
    attn = e * (1.0 / s)

    # context = attn @ V, feeding the MXU in V's dtype.
    ctx = jnp.einsum("gqk,gkd->gqd", attn.astype(v.dtype), v,
                     preferred_element_type=jnp.float32)           # [G,TQ,D] f32

    attn_ref[...] = attn.astype(attn_ref.dtype)
    ctx_ref[...] = ctx.astype(ctx_ref.dtype)


def _vmem_capacity_bytes():
    """Physical per-core VMEM, with a v7x-safe fallback."""
    try:
        cap = int(pltpu.get_tpu_info().vmem_capacity_bytes)
        if cap > 0:
            return cap
    except Exception:  # interpret mode / older runtimes
        pass
    return 64 << 20    # conservative: v7x has 64 MiB per TensorCore


def _vmem_estimate(g, tq, S, D, in_bytes, out_bytes):
    inputs = 2 * g * (tq * D + 2 * S * D) * in_bytes    # double-buffered Q/K/V tiles
    outputs = 2 * g * (tq * D + tq * S) * out_bytes     # double-buffered ctx/attn tiles
    interm = 3 * g * tq * S * 4                         # live f32 scores/exp/probs
    return inputs + outputs + interm


def _pick_tiles(BH, S, D, in_bytes, out_bytes, budget_bytes):
    """Choose (head group G, query tile TQ) for a (BH//G, S//TQ) grid."""
    if S <= 256:
        # Short sequences: a single head's work is far below the per-step
        # overhead, so fold as many heads per step as VMEM allows.  Keep at
        # least two BH steps so megacore (v7x) can shard them.
        tq = S
        g = 1
        max_g = max(1, BH // 2)
        for cand in range(1, max_g + 1):
            if BH % cand == 0 and _vmem_estimate(
                    cand, tq, S, D, in_bytes, out_bytes) <= budget_bytes:
                g = cand
        return g, tq
    # Long sequences: one head per step, largest query tile that fits VMEM.
    for tq in (2048, 1024, 512, 256, 128, 64, 32, 16, 8):
        if tq <= S and S % tq == 0 and _vmem_estimate(
                1, tq, S, D, in_bytes, out_bytes) <= budget_bytes:
            return 1, tq
    return 1, S    # small / odd S: full-extent block is always legal


def scaled_dot_product_attention(Q, K, V):
    """Pallas TPU implementation of ScaledDotProductAttention.forward."""
    B, H, S, D = Q.shape
    assert K.shape == (B, H, S, D) and V.shape == (B, H, S, D)
    BH = B * H

    in_bytes = jnp.dtype(Q.dtype).itemsize
    out_bytes = in_bytes

    physical = _vmem_capacity_bytes()
    # Generation-aware tile budget: ~96 MiB on 128-MiB parts (v5e/v6e),
    # ~40 MiB on 64-MiB parts (v7x), always leaving compiler headroom.
    budget = min(physical - (24 << 20), (physical * 3) // 4)

    G, TQ = _pick_tiles(BH, S, D, in_bytes, out_bytes, budget)
    n_bh = BH // G
    n_q = S // TQ

    est = _vmem_estimate(G, TQ, S, D, in_bytes, out_bytes)
    vmem_limit = int(min(max(2 * est, 32 << 20), physical - (8 << 20)))

    q3 = Q.reshape(BH, S, D)
    k3 = K.reshape(BH, S, D)
    v3 = V.reshape(BH, S, D)

    cost = pl.CostEstimate(
        flops=4 * BH * S * S * D,                        # QK^T + attn@V
        transcendentals=BH * S * S,                      # softmax exp
        bytes_accessed=3 * BH * S * D * in_bytes
        + (BH * S * D + BH * S * S) * out_bytes,
    )

    ctx, attn = pl.pallas_call(
        _sdpa_kernel,
        out_shape=(
            jax.ShapeDtypeStruct((BH, S, D), Q.dtype),    # context
            jax.ShapeDtypeStruct((BH, S, S), Q.dtype),    # attention probs
        ),
        grid_spec=pltpu.PrefetchScalarGridSpec(
            num_scalar_prefetch=0,
            grid=(n_bh, n_q),
            in_specs=[
                pl.BlockSpec((G, TQ, D), lambda g, qi: (g, qi, 0)),   # Q tile
                pl.BlockSpec((G, S, D), lambda g, qi: (g, 0, 0)),     # full K
                pl.BlockSpec((G, S, D), lambda g, qi: (g, 0, 0)),     # full V
            ],
            out_specs=(
                pl.BlockSpec((G, TQ, D), lambda g, qi: (g, qi, 0)),   # ctx tile
                pl.BlockSpec((G, TQ, S), lambda g, qi: (g, qi, 0)),   # attn tile
            ),
        ),
        compiler_params=pltpu.CompilerParams(
            # BH axis shards across megacore TCs; the query axis stays
            # sequential per core so the full-K/V blocks (same block index
            # across qi) are reused instead of re-DMA'd per query tile.
            dimension_semantics=("parallel", "arbitrary"),
            vmem_limit_bytes=vmem_limit,
        ),
        cost_estimate=cost,
    )(q3, k3, v3)

    return ctx.reshape(B, H, S, D), attn.reshape(B, H, S, S)


def _reference(Q, K, V):
    scores = jnp.einsum("bhqd,bhkd->bhqk", Q, K) / math.sqrt(d_k)
    attn = jax.nn.softmax(scores, axis=-1)
    ctx = jnp.einsum("bhqk,bhkd->bhqd", attn, V)
    return ctx, attn


if __name__ == "__main__":
    B, H, S, D = 2, 4, 8, d_k
    key = jax.random.PRNGKey(0)
    kq, kk, kv = jax.random.split(key, 3)
    Q = jax.random.normal(kq, (B, H, S, D), dtype=jnp.float32)
    K = jax.random.normal(kk, (B, H, S, D), dtype=jnp.float32)
    V = jax.random.normal(kv, (B, H, S, D), dtype=jnp.float32)

    ctx, attn = scaled_dot_product_attention(Q, K, V)
    jax.block_until_ready((ctx, attn))

    ctx_ref, attn_ref = _reference(Q, K, V)
    assert jnp.allclose(ctx, ctx_ref, atol=1e-3, rtol=1e-3), "context mismatch"
    assert jnp.allclose(attn, attn_ref, atol=1e-3, rtol=1e-3), "attn mismatch"

    print("KERNEL_OK")
</pallas_src>

<mosaic_0001>
module attributes {stable_mosaic.version = 11 : i64} {
  func.func @_sdpa_kernel(%arg0: i32, %arg1: i32, %arg2: memref<4x8x32xf32, #tpu.memory_space<vmem>>, %arg3: memref<4x8x32xf32, #tpu.memory_space<vmem>>, %arg4: memref<4x8x32xf32, #tpu.memory_space<vmem>>, %arg5: memref<4x8x32xf32, #tpu.memory_space<vmem>>, %arg6: memref<4x8x8xf32, #tpu.memory_space<vmem>>) attributes {dimension_semantics = [#tpu.dimension_semantics<parallel>, #tpu.dimension_semantics<arbitrary>], iteration_bounds = array<i64: 2, 1>, scalar_prefetch = 0 : i64, scratch_operands = 0 : i64, tpu.core_type = #tpu.core_type<tc>, window_params = [{transform_indices = @transform_0, window_bounds = array<i64: 4, 8, 32>}, {transform_indices = @transform_1, window_bounds = array<i64: 4, 8, 32>}, {transform_indices = @transform_2, window_bounds = array<i64: 4, 8, 32>}, {transform_indices = @transform_3, window_bounds = array<i64: 4, 8, 32>}, {transform_indices = @transform_4, window_bounds = array<i64: 4, 8, 8>}]} {
    %c0 = arith.constant 0 : index
    %c0_0 = arith.constant 0 : index
    %c0_1 = arith.constant 0 : index
    %0 = vector.load %arg2[%c0, %c0_0, %c0_1] : memref<4x8x32xf32, #tpu.memory_space<vmem>>, vector<4x8x32xf32>
    %cst = arith.constant 0.176776692 : f32
    %1 = vector.broadcast %cst : f32 to vector<4x8x32xf32>
    %2 = arith.mulf %0, %1 : vector<4x8x32xf32>
    %c0_2 = arith.constant 0 : index
    %c0_3 = arith.constant 0 : index
    %c0_4 = arith.constant 0 : index
    %3 = vector.load %arg3[%c0_2, %c0_3, %c0_4] : memref<4x8x32xf32, #tpu.memory_space<vmem>>, vector<4x8x32xf32>
    %c0_5 = arith.constant 0 : index
    %c0_6 = arith.constant 0 : index
    %c0_7 = arith.constant 0 : index
    %4 = vector.load %arg4[%c0_5, %c0_6, %c0_7] : memref<4x8x32xf32, #tpu.memory_space<vmem>>, vector<4x8x32xf32>
    "tpu.trace_start"() <{level = 10 : i32, message = "gqd,gkd->gqk"}> : () -> ()
    %cst_8 = arith.constant dense<0.000000e+00> : vector<4x8x8xf32>
    %5 = tpu.matmul %2, %3, %cst_8 {dimension_numbers = #tpu.dot_dimension_numbers<[2], [2], [1], [1], [0, 0, 0, 1, 1, 1], [0], [0]>} : vector<4x8x32xf32>, vector<4x8x32xf32>, vector<4x8x8xf32> -> vector<4x8x8xf32>
    "tpu.trace_stop"() : () -> ()
    %cst_9 = arith.constant dense<0xFF800000> : vector<4x8xf32>
    %6 = vector.multi_reduction <maximumf>, %5, %cst_9 [2] : vector<4x8x8xf32> to vector<4x8xf32>
    %7 = vector.shape_cast %6 : vector<4x8xf32> to vector<4x8x1xf32>
    %8 = vector.broadcast %7 : vector<4x8x1xf32> to vector<4x8x8xf32>
    %9 = arith.subf %5, %8 : vector<4x8x8xf32>
    %10 = math.exp %9 : vector<4x8x8xf32>
    %cst_10 = arith.constant dense<0.000000e+00> : vector<4x8xf32>
    %11 = vector.multi_reduction <add>, %10, %cst_10 [2] : vector<4x8x8xf32> to vector<4x8xf32>
    %12 = vector.shape_cast %11 : vector<4x8xf32> to vector<4x8x1xf32>
    %cst_11 = arith.constant 1.000000e+00 : f32
    %13 = vector.broadcast %cst_11 : f32 to vector<4x8x1xf32>
    %14 = arith.divf %13, %12 : vector<4x8x1xf32>
    %15 = vector.broadcast %14 : vector<4x8x1xf32> to vector<4x8x8xf32>
    %16 = arith.mulf %10, %15 : vector<4x8x8xf32>
    "tpu.trace_start"() <{level = 10 : i32, message = "gqk,gkd->gqd"}> : () -> ()
    %cst_12 = arith.constant dense<0.000000e+00> : vector<4x8x32xf32>
    %17 = tpu.matmul %16, %4, %cst_12 {dimension_numbers = #tpu.dot_dimension_numbers<[2], [1], [1], [2], [0, 0, 0, 1, 1, 2], [0], [0]>} : vector<4x8x8xf32>, vector<4x8x32xf32>, vector<4x8x32xf32> -> vector<4x8x32xf32>
    "tpu.trace_stop"() : () -> ()
    %c0_13 = arith.constant 0 : index
    %c0_14 = arith.constant 0 : index
    %c0_15 = arith.constant 0 : index
    %18 = vector.load %arg6[%c0_13, %c0_14, %c0_15] : memref<4x8x8xf32, #tpu.memory_space<vmem>>, vector<4x8x8xf32>
    tpu.vector_store %arg6[%c0_13, %c0_14, %c0_15], %16 {strides = array<i32>} : memref<4x8x8xf32, #tpu.memory_space<vmem>>, vector<4x8x8xf32>,
    %c0_16 = arith.constant 0 : index
    %c0_17 = arith.constant 0 : index
    %c0_18 = arith.constant 0 : index
    %19 = vector.load %arg5[%c0_16, %c0_17, %c0_18] : memref<4x8x32xf32, #tpu.memory_space<vmem>>, vector<4x8x32xf32>
    tpu.vector_store %arg5[%c0_16, %c0_17, %c0_18], %17 {strides = array<i32>} : memref<4x8x32xf32, #tpu.memory_space<vmem>>, vector<4x8x32xf32>,
    return
  }
  func.func @transform_0(%arg0: i32, %arg1: i32) -> (i32, i32, i32) {
    %c0_i32 = arith.constant 0 : i32
    %c0_i32_0 = arith.constant 0 : i32
    return %arg0, %arg1, %c0_i32 : i32, i32, i32
  }
  func.func @transform_1(%arg0: i32, %arg1: i32) -> (i32, i32, i32) {
    %c0_i32 = arith.constant 0 : i32
    %c0_i32_0 = arith.constant 0 : i32
    %c0_i32_1 = arith.constant 0 : i32
    return %arg0, %c0_i32, %c0_i32_0 : i32, i32, i32
  }
  func.func @transform_2(%arg0: i32, %arg1: i32) -> (i32, i32, i32) {
    %c0_i32 = arith.constant 0 : i32
    %c0_i32_0 = arith.constant 0 : i32
    %c0_i32_1 = arith.constant 0 : i32
    return %arg0, %c0_i32, %c0_i32_0 : i32, i32, i32
  }
  func.func @transform_3(%arg0: i32, %arg1: i32) -> (i32, i32, i32) {
    %c0_i32 = arith.constant 0 : i32
    %c0_i32_0 = arith.constant 0 : i32
    return %arg0, %arg1, %c0_i32 : i32, i32, i32
  }
  func.func @transform_4(%arg0: i32, %arg1: i32) -> (i32, i32, i32) {
    %c0_i32 = arith.constant 0 : i32
    %c0_i32_0 = arith.constant 0 : i32
    return %arg0, %arg1, %c0_i32 : i32, i32, i32
  }
}

</mosaic_0001>

<bundles_post_ra>
// kernel: tpu_custom_call.1
= control target key start
LH: loop header
LB: loop body
LE: loop exit
PB: predicated region body
PF: predicated region fallthrough
CT: control target
= control target key end

     0   :  { %s1474_s0 = inlined_call_operand.hbm [shape: f32[8,8,32], index: 0, kind: input, shape index: {}]   ;;  %s1475_s1 = inlined_call_operand.hbm [shape: f32[8,8,32], index: 1, kind: input, shape index: {}]   ;;  %s1476_s2 = inlined_call_operand.hbm [shape: f32[8,8,32], index: 2, kind: input, shape index: {}]   ;;  %s1477_s3 = inlined_call_operand.hbm [shape: f32[8,8,32], index: 3, kind: output, shape index: {0}]   ;;  %s1478_s4 = inlined_call_operand.hbm [shape: f32[8,8,8], index: 4, kind: output, shape index: {1}]  }
   0x1   :  { %1485 = sst [smem:[#allocation21_spill]] %s1475_s1 }
   0x2   :  { %10 = vsyncpa [#allocation3], 0 }
   0x3   :  { %12 = vsyncpa [#allocation3 + $0x1], 0 }
   0x4   :  { %13 = vsyncpa [#allocation6], 0 }
   0x5   :  { %15 = vsyncpa [#allocation6 + $0x1], 0 }
   0x6   :  { %16 = vsyncpa [#allocation4], 0 }
   0x7   :  { %18 = vsyncpa [#allocation4 + $0x1], 0 }
   0x8   :  { %19 = vsyncpa [#allocation10], 0 }
   0x9   :  { %21 = vsyncpa [#allocation10 + $0x1], 0  ;;  %s1239_s15 = smov 0   ;;  %s1241_s16 = smov 0  }
   0xa   :  { %s1243_s17 = smov 0   ;;  %s1245_s18 = smov 0  }
   0xb   :  { %s1247_s19 = smov 0   ;;  %s1249_s20 = smov 0  }
   0xc LB: > { %1486 = sst [smem:[#allocation15_spill]] %s1196_s17  ;;  %s1270_s21 = sadd.s32 4294967295, %s1208_s20   ;;  %s1208_s20 = sphi %s1249_s20, %s27_s20   ;;  %s1204_s19 = sphi %s1247_s19, %s1504_s19   ;;  %s1200_s18 = sphi %s1245_s18, %s1503_s18   ;;  %s1196_s17 = sphi %s1243_s17, %s1502_s17   ;;  %s1192_s16 = sphi %s1241_s16, %s1506_s16   ;;  %s1188_s15 = sphi %s1239_s15, %s1505_s15  }
   0xd   : > { %1487 = sst [smem:[#allocation16_spill]] %s1204_s19  ;;  %s860_s22 = sadd.s32 4294967294, %s1208_s20  }
   0xe   : > { %1488 = sst [smem:[#allocation17_spill]] %s1208_s20  ;;  %s39_s23 = sadd.s32 1, %s1204_s19 }
   0xf   : > { %s48_s24 = sadd.s32 1, %s1196_s17  ;;  %p41_p0 = scmp.ge.s32.totalorder %s39_s23, 2 }
  0x10   : > { %p55_p1 = scmp.ne.s32.totalorder %s1196_s17, %s1192_s16  ;;  %p56_p2 = scmp.eq.s32.totalorder %s1208_s20, 0 }
  0x11   : > { %p61_p3 = scmp.ne.s32.totalorder %s1192_s16, %s1188_s15  ;;  %s1508_s23 = smov (%p41_p0, %s39_s23), 0 }
  0x12   : > { %1489 = sst [smem:[#allocation18_spill]] %s1508_s23  ;;  %p1282_p4 = por %p56_p2, %p55_p1 }
  0x13   : > { %p62_p5 = scmp.eq.s32.totalorder %s1270_s21, 0  ;;  %s43_s26 = ssub.s32 %s1204_s19, %s1508_s23 }
  0x14   : > { %p139_p6 = scmp.eq.s32.totalorder %s1270_s21, 1  ;;  %p46_p7 = scmp.eq.s32.totalorder %s43_s26, 0 }
  0x15   : > { %p1290_p8 = por %p62_p5, %p61_p3  ;;  %p145_p10 = scmp.eq.s32.totalorder %s860_s22, 1 }
  0x16   : > { %p1294_p9 = por %p139_p6, %p55_p1  ;;  %p862_p12 = scmp.ge.s32.totalorder %s1208_s20, 2 }
  0x17   : > { %s1299_s29 = scalar_select %p46_p7, %s1196_s17, %s48_s24  }
  0x18   : > { %p1301_p11 = por %p145_p10, %p61_p3  ;;  %p930_p13 = scmp.lt.s32.totalorder %s1208_s20, 2 }
  0x19   : > { %1493 = sst [smem:[#allocation19_spill]] %s1299_s29  ;;  %s193_s5 = sand.u32 1, %s1196_s17  }
  0x1a   : > { %s1494_s30 = scalar_select %p1301_p11, 1, 0 }
  0x1b   : > { %s1308_s6 = sshll.u32 %s193_s5, 5  ;;  %s898_s7 = sshll.u32 %s1204_s19, 5 }
  0x1c   : > { %1495 = sst [smem:[#allocation20_spill]] %s1494_s30  ;;  %p1313_p0 = pnand %p930_p13, %p1282_p4 }
  0x1d   : > { %s216_s9 = sand.u32 1, %s1208_s20   ;;  %s1497_s1 = sld [smem:[#allocation21_spill]] }
  0x1e   : > { %s220_s14 = scalar_lea.vmem [#allocation5], %s1308_s6  ;;  %s217_s24 = scalar_lea.sflag [#allocation6], %s216_s9 }
  0x1f   : > { %s228_s22 = sshll.u32 %s220_s14, 4  ;;  %s1210_s26 = smov 128   ;;  %s229_s22 = int_to_ptr.vmem [resolvable:$true] %s228_s22 }
  0x20   : > { %s1211_s25 = smov 8   ;;  %p872_p1 = scmp.ge.s32.totalorder %s1208_s20, 1 }
  0x21   : > { %p258_p2 = scmp.lt.s32.totalorder %s1208_s20, 3  ;;  %s194_s9 = scalar_lea.sflag [#allocation3], %s193_s5 }
  0x22   : > { %s247_s29 = scalar_lea.hbm %s1476_s2, %s898_s7  ;;  %s242_s20 = scalar_lea.vmem [#allocation7], %s1308_s6 }
  0x23   : > { %s225_s12 = scalar_lea.hbm %s1497_s1, %s898_s7  ;;  %p1326_p3 = pnand %p872_p1, %p258_p2 }
  0x24   : > { %s226_s13 = sshll.u32 %s225_s12, 4  ;;  %s203_s12 = scalar_lea.hbm %s1474_s0, %s898_s7  ;;  %s227_s13 = int_to_ptr.hbm [resolvable:$true] %s226_s13 }
  0x25   : > { %919 = dma.hbm_to_vmem [thread:$0]  (!%p1313_p0), %s227_s13, 512, %s229_s22, %s217_s24, %s1210_s26, %s1210_s26, %s1211_s25  }
  0x26   : > { %s204_s14 = sshll.u32 %s203_s12, 4  ;;  %s197_s1 = scalar_lea.vmem [#allocation2], %s1308_s6  ;;  %s205_s14 = int_to_ptr.hbm [resolvable:$true] %s204_s14 }
  0x27   : > { %s206_s19 = sshll.u32 %s197_s1, 4  ;;  %s248_s17 = sshll.u32 %s247_s29, 4  ;;  %s207_s19 = int_to_ptr.vmem [resolvable:$true] %s206_s19  ;;  %s249_s17 = int_to_ptr.hbm [resolvable:$true] %s248_s17 }
  0x28   : > { %916 = dma.hbm_to_vmem [thread:$0]  (!%p1313_p0), %s205_s14, 512, %s207_s19, %s194_s9, %s1210_s26, %s1210_s26, %s1211_s25  }
  0x29   : > { %s250_s30 = sshll.u32 %s242_s20, 4  ;;  %262 = sbr.rel (%p1326_p3) target bundleno = 593 (0x251), region = 32  ;;  %s251_s30 = int_to_ptr.vmem [resolvable:$true] %s250_s30 }
  0x2a   : > { %922 = dma.hbm_to_vmem [thread:$0]  (!%p1313_p0), %s249_s17, 512, %s251_s30, %s217_s24, %s1210_s26, %s1210_s26, %s1211_s25  }
  0x2b   : > { %s1345_s1 = sand.u32 (!%p1326_p3), 1, %s1192_s16  }
  0x2c   : > { %s1348_s19 = sshll.u32 (!%p1326_p3), %s1345_s1, 5  ;;  %s265_s5 = scalar_lea.sflag (!%p1326_p3), [#allocation3], %s1345_s1 }
  0x2d   : > { %s268_s29 = scalar_lea.vmem (!%p1326_p3), [#allocation2], %s1348_s19 }
  0x2e   : > { %1171 = dma.done.wait (%p1290_p8), %s265_s5, 512  }
  0x2f   : > { %1173 = vsyncadd (%p1290_p8), %s265_s5, 4294966784  ;;  %s274_s17 = sand.u32 1, %s1270_s21   ;;  %s278_s23 = scalar_lea.vmem [#allocation5], %s1348_s19 }
  0x30   : > { %s275_s20 = scalar_lea.sflag [#allocation6], %s274_s17 }
  0x31   : > { %1175 = dma.done.wait (%p1290_p8), %s275_s20, 1024  }
  0x32   : > { %1177 = vsyncadd (%p1290_p8), %s275_s20, 4294966272  ;;  %vm350_vm0 = vcmask 261120   ;;  %v342_v0 = vld [vmem:[%s278_s23] sm:$0xff]  ;;  %v344_v1 = vld [vmem:[%s278_s23 + $0x10] sm:$0xff]  ;;  %vm455_vm1 = vcmask 64512   ;;  %s288_s21 = scalar_lea.vmem [#allocation7], %s1348_s19 }
  0x33   : > { %v334_v2 = vld [vmem:[%s268_s29] sm:$0xff]  ;;  %878 = vmatpush.xpose.msk.msra.mxu0 %vm350_vm0, %v342_v0  ;;  %882 = vmatpush.xpose.msk.msra.mxu2 %vm350_vm0, %v344_v1  ;;  %v336_v4 = vld [vmem:[%s268_s29 + $0x10] sm:$0xff]  ;;  %v343_v5 = vld [vmem:[%s278_s23 + $0x8] sm:$0xff]  ;;  %s1390_s27 = scalar_lea.vmem [#allocation9], %s1348_s19  ;;  %s901_s30 = sshll.u32 %s1200_s18, 5 }
  0x34   : > { %v338_v3 = vmul.f32 0.17677669, %v334_v2  ;;  %v345_v6 = vld [vmem:[%s278_s23 + $0x18] sm:$0xff]  ;;  %v340_v7 = vmul.f32 0.17677669, %v336_v4  ;;  %880 = vmatpush.xpose.msk.msra.mxu1 %vm350_vm0, %v343_v5  ;;  %v335_v8 = vld [vmem:[%s268_s29 + $0x8] sm:$0xff]  ;;  %s692_s8 = scalar_lea.hbm %s1478_s4, %s901_s30 }
  0x35   : > { %884 = vmatpush.xpose.msk.msra.mxu3 %vm350_vm0, %v345_v6  ;;  %v337_v9 = vld [vmem:[%s268_s29 + $0x18] sm:$0xff]  ;;  %v339_v10 = vmul.f32 0.17677669, %v335_v8  ;;  %v346_v40 = vld [vmem:[%s288_s21] sm:$0xff]  ;;  %v348_v41 = vld [vmem:[%s288_s21 + $0x10] sm:$0xff]  ;;  %s693_s24 = sshll.u32 %s1390_s27, 4  ;;  %s694_s24 = int_to_ptr.vmem [resolvable:$true] %s693_s24 }
  0x36   : > { %v341_v11 = vmul.f32 0.17677669, %v337_v9  ;;  %879 = vmatmul.msk.f32.vlgmr.msra.gmra.mxu0 %vm350_vm0, %v338_v3  ;;  %883 = vmatmul.msk.f32.vlgmr.msra.gmra.mxu2 %vm350_vm0, %v340_v7  ;;  %v347_v42 = vld [vmem:[%s288_s21 + $0x8] sm:$0xff]  ;;  %v349_v43 = vld [vmem:[%s288_s21 + $0x18] sm:$0xff]  ;;  %s695_s26 = sshll.u32 %s692_s8, 4  ;;  %s662_s25 = scalar_lea.sflag [#allocation10], %s1345_s1  ;;  %s696_s26 = int_to_ptr.hbm [resolvable:$true] %s695_s26 }
  0x37   : > { %881 = vmatmul.msk.f32.vlgmr.msra.gmra.mxu1 %vm350_vm0, %v339_v10  ;;  %574 = vmatpush.msrb.mxu0 %v346_v40  ;;  %s1104_s10 = sshra.s32 %s696_s26, 4  ;;  %s1110_s9 = scalar_lea.hbm %s1478_s4, 64  ;;  %s1105_s10 = int_to_ptr.hbm [resolvable:$true] %s1104_s10 }
  0x38   : > { %885 = vmatmul.msk.f32.vlgmr.msra.gmra.mxu3 %vm350_vm0, %v341_v11  ;;  %620 = vmatpush.msrb.mxu2 %v348_v41  ;;  %s1106_s11 = scalar_lea.hbm %s1105_s10, 32  ;;  %p1111_p7 = scmp.lt.s32.totalorder %s1105_s10, %s1478_s4 }
  0x39   : > { %597 = vmatpush.msrb.mxu1 %v347_v42  ;;  %643 = vmatpush.msrb.mxu3 %v349_v43  ;;  %p1107_p4 = scmp.ne.s32.totalorder %s1105_s10, %s1106_s11  ;;  %p1112_p8 = scmp.lt.s32.totalorder %s1110_s9, %s1106_s11 }
  0x3b   : > { %p1108_p5 = pnand %p1107_p4, %p1294_p9  ;;  %p1113_p10 = por %p1112_p8, %p1111_p7 }
  0x3d   : > { %p1109_p6 = pneg %p1108_p5 }
  0x3f   : > { %p1114_p13 = pnand %p1113_p10, %p1109_p6 }
  0xb3   : > { %v374_v12 = vpop.f32.mrf.mxu0 }
  0xb4   : > { %v456_v13 = vsel %vm455_vm1, %v374_v12, -inf  ;;  %v400_v14 = vpop.f32.mrf.mxu1 }
  0xb5   : > { %457 = vmax.xlane.f32.xlu1 %v456_v13  ;;  %v459_v17 = vsel %vm455_vm1, %v400_v14, -inf }
  0xb9   : > { %v426_v15 = vpop.f32.mrf.mxu2 }
  0xba   : > { %v462_v16 = vsel %vm455_vm1, %v426_v15, -inf }
  0xbb   : > { %463 = vmax.xlane.f32.xlu0 %v462_v16  ;;  %v452_v18 = vpop.f32.mrf.mxu3 }
  0xbc   : > { %v465_v19 = vsel %vm455_vm1, %v452_v18, -inf }
  0xbd   : > { %460 = vmax.xlane.f32.xlu1 %v459_v17 }
  0xc3   : > { %466 = vmax.xlane.f32.xlu0 %v465_v19 }
 0x128   : > { %v458_v20 = vpop.xlane.xlu1 %457 }
 0x129   : > { %v468_v21 = vsub.f32 %v374_v12, %v458_v20 }
 0x12b   : > { %v472_v22 = vmul.f32 1.442695, %v468_v21 }
 0x12d   : > { %984 = vpow2.f32 %v472_v22 }
 0x12e   : > { %v464_v23 = vpop.xlane.xlu0 %463 }
 0x12f   : > { %v470_v24 = vsub.f32 %v426_v15, %v464_v23 }
 0x130   : > { %v461_v25 = vpop.xlane.xlu1 %460 }
 0x131   : > { %v476_v26 = vmul.f32 1.442695, %v470_v24  ;;  %v469_v27 = vsub.f32 %v400_v14, %v461_v25 }
 0x133   : > { %v985_v28 = vpop.eup %984  ;;  %986 = vpow2.f32 %v476_v26  ;;  %v474_v29 = vmul.f32 1.442695, %v469_v27 }
 0x134   : > { %v480_v30 = vsel %vm455_vm1, %v985_v28, 0.0 }
 0x135   : > { %988 = vpow2.f32 %v474_v29  ;;  %481 = vadd.xlane.f32.xlu0 %v480_v30 }
 0x136   : > { %v467_v31 = vpop.xlane.xlu0 %466 }
 0x137   : > { %v471_v32 = vsub.f32 %v452_v18, %v467_v31 }
 0x139   : > { %v1375_v33 = vpop.eup %986  ;;  %v478_v34 = vmul.f32 1.442695, %v471_v32 }
 0x13a   : > { %v486_v35 = vsel %vm455_vm1, %v1375_v33, 0.0 }
 0x13b   : > { %v1379_v36 = vpop.eup %988  ;;  %990 = vpow2.f32 %v478_v34  ;;  %487 = vadd.xlane.f32.xlu2 %v486_v35 }
 0x13c   : > { %v483_v37 = vsel %vm455_vm1, %v1379_v36, 0.0 }
 0x13d   : > { %484 = vadd.xlane.f32.xlu1 %v483_v37 }
 0x141   : > { %v1383_v38 = vpop.eup %990 }
 0x142   : > { %v489_v39 = vsel %vm455_vm1, %v1383_v38, 0.0 }
 0x143   : > { %490 = vadd.xlane.f32.xlu2 %v489_v39 }
 0x1a8   : > { %v482_v44 = vpop.xlane.xlu0 %481 }
 0x1a9   : > { %992 = vrcp.f32 %v482_v44  ;;  %v503_v50 = vand.u32 2147483648, %v482_v44  ;;  %v501_v52 = vand.u32 2147483647, %v482_v44  ;;  %vm497_vm3 = vweird.f32 %v482_v44 }
 0x1ab   : > { %v504_v58 = vor.u32 1.1754944e-38, %v503_v50  ;;  %vm502_vm5 = vcmp.eq.f32.partialorder %v501_v52, 8.507059e+37 }
 0x1ae   : > { %v488_v45 = vpop.xlane.xlu2 %487 }
 0x1af   : > { %v993_v46 = vpop.eup %992  ;;  %994 = vrcp.f32 %v488_v45  ;;  %v531_v62 = vand.u32 2147483647, %v488_v45  ;;  %v533_v63 = vand.u32 2147483648, %v488_v45  ;;  %vm527_vm7 = vweird.f32 %v488_v45 }
 0x1b0   : > { %v493_v47 = vmul.f32 %v993_v46, %v482_v44  ;;  %v485_v48 = vpop.xlane.xlu1 %484  ;;  %vm498_vm2 = vweird.f32 %v993_v46 }
 0x1b1   : > { %996 = vrcp.f32 %v485_v48  ;;  %vm499_vm4 = vmor %vm497_vm3, %vm498_vm2  ;;  %v518_v4 = vand.u32 2147483648, %v485_v48  ;;  %v516_v7 = vand.u32 2147483647, %v485_v48  ;;  %vm532_vm10 = vcmp.eq.f32.partialorder %v531_v62, 8.507059e+37 }
 0x1b2   : > { %v494_v49 = vsub.f32 1.0, %v493_v47  ;;  %v534_v9 = vor.u32 1.1754944e-38, %v533_v63  ;;  %vm512_vm11 = vweird.f32 %v485_v48 }
 0x1b3   : > { %v519_v13 = vor.u32 1.1754944e-38, %v518_v4  ;;  %vm517_vm13 = vcmp.eq.f32.partialorder %v516_v7, 8.507059e+37 }
 0x1b4   : > { %v495_v51 = vmul.f32 %v993_v46, %v494_v49 }
 0x1b5   : > { %v995_v53 = vpop.eup %994 }
 0x1b6   : > { %v496_v54 = vadd.f32 %v993_v46, %v495_v51  ;;  %v523_v55 = vmul.f32 %v995_v53, %v488_v45  ;;  %v491_v56 = vpop.xlane.xlu2 %490  ;;  %vm528_vm6 = vweird.f32 %v995_v53 }
 0x1b7   : > { %v997_v57 = vpop.eup %996  ;;  %998 = vrcp.f32 %v491_v56  ;;  %vm529_vm9 = vmor %vm527_vm7, %vm528_vm6  ;;  %v548_v18 = vand.u32 2147483648, %v491_v56  ;;  %v546_v21 = vand.u32 2147483647, %v491_v56  ;;  %vm542_vm15 = vweird.f32 %v491_v56 }
 0x1b8   : > { %v500_v59 = vsel %vm499_vm4, %v993_v46, %v496_v54  ;;  %v524_v60 = vsub.f32 1.0, %v523_v55  ;;  %v508_v61 = vmul.f32 %v997_v57, %v485_v48  ;;  %vm513_vm8 = vweird.f32 %v997_v57 }
 0x1b9   : > { %v505_v0 = vsel %vm502_vm5, %v504_v58, %v500_v59  ;;  %vm514_vm12 = vmor %vm512_vm11, %vm513_vm8  ;;  %v549_v24 = vor.u32 1.1754944e-38, %v548_v18  ;;  %vm547_vm3 = vcmp.eq.f32.partialorder %v546_v21, 8.507059e+37 }
 0x1ba   : > { %v525_v1 = vmul.f32 %v995_v53, %v524_v60  ;;  %v509_v2 = vsub.f32 1.0, %v508_v61  ;;  %v552_v3 = vmul.f32 %v985_v28, %v505_v0 }
 0x1bc   : > { %v526_v5 = vadd.f32 %v995_v53, %v525_v1  ;;  %v510_v6 = vmul.f32 %v997_v57, %v509_v2  ;;  %886 = vmatmul.msk.f32.vlgmr.msrb.gmra.mxu0 %vm455_vm1, %v552_v3  ;;  %648 = vst.msk [vmem:[%s1390_s27] sm:$0xff] %vm455_vm1, %v552_v3 }
 0x1bd   : > { %v999_v8 = vpop.eup %998 }
 0x1be   : > { %v511_v10 = vadd.f32 %v997_v57, %v510_v6  ;;  %v538_v11 = vmul.f32 %v999_v8, %v491_v56  ;;  %v530_v12 = vsel %vm529_vm9, %v995_v53, %v526_v5  ;;  %vm543_vm14 = vweird.f32 %v999_v8 }
 0x1bf   : > { %v535_v14 = vsel %vm532_vm10, %v534_v9, %v530_v12  ;;  %vm544_vm2 = vmor %vm542_vm15, %vm543_vm14 }
 0x1c0   : > { %v515_v15 = vsel %vm514_vm12, %v997_v57, %v511_v10  ;;  %v539_v16 = vsub.f32 1.0, %v538_v11  ;;  %v554_v17 = vmul.f32 %v1375_v33, %v535_v14 }
 0x1c1   : > { %v520_v19 = vsel %vm517_vm13, %v519_v13, %v515_v15 }
 0x1c2   : > { %v540_v20 = vmul.f32 %v999_v8, %v539_v16  ;;  %888 = vmatmul.msk.f32.vlgmr.msrb.gmra.mxu2 %vm455_vm1, %v554_v17  ;;  %650 = vst.msk [vmem:[%s1390_s27 + $0x10] sm:$0xff] %vm455_vm1, %v554_v17  ;;  %v553_v22 = vmul.f32 %v1379_v36, %v520_v19 }
 0x1c4   : > { %v541_v23 = vadd.f32 %v999_v8, %v540_v20  ;;  %887 = vmatmul.msk.f32.vlgmr.msrb.gmra.mxu1 %vm455_vm1, %v553_v22  ;;  %649 = vst.msk [vmem:[%s1390_s27 + $0x8] sm:$0xff] %vm455_vm1, %v553_v22 }
 0x1c6   : > { %v545_v25 = vsel %vm544_vm2, %v999_v8, %v541_v23 }
 0x1c7   : > { %v550_v26 = vsel %vm547_vm3, %v549_v24, %v545_v25 }
 0x1c8   : > { %v555_v27 = vmul.f32 %v1383_v38, %v550_v26 }
 0x1ca   : > { %889 = vmatmul.msk.f32.vlgmr.msrb.gmra.mxu3 %vm455_vm1, %v555_v27  ;;  %651 = vst.msk [vmem:[%s1390_s27 + $0x18] sm:$0xff] %vm455_vm1, %v555_v27 }
 0x1cb   : > { %1117 = shalt.err (!%p1114_p13)
}
 0x1cc   : > { %s1212_s5 = smov 128   ;;  %s1213_s29 = smov 8  }
 0x1cd   : > { %910 = dma.vmem_to_hbm [thread:$0]  (%p1294_p9), %s694_s24, 512, %s696_s26, %s662_s25, %s1212_s5, %s1212_s5, %s1213_s29  }
 0x1ce   : > { %s321_s17 = scalar_lea.vmem [#allocation8], %s1348_s19  ;;  %s674_s21 = scalar_lea.hbm %s1477_s3, %s901_s30 }
 0x1cf   : > { %s675_s27 = sshll.u32 %s321_s17, 4  ;;  %s677_s6 = sshll.u32 %s674_s21, 4  ;;  %s676_s27 = int_to_ptr.vmem [resolvable:$true] %s675_s27  ;;  %s678_s6 = int_to_ptr.hbm [resolvable:$true] %s677_s6 }
 0x1d0   : > { %s657_s19 = scalar_lea.sflag [#allocation4], %s1345_s1  ;;  %s1132_s7 = sshra.s32 %s678_s6, 4  ;;  %s1133_s7 = int_to_ptr.hbm [resolvable:$true] %s1132_s7 }
 0x1d1   : > { %s1134_s8 = scalar_lea.hbm %s1133_s7, 32  ;;  %s1138_s26 = scalar_lea.hbm %s1477_s3, 64 }
 0x1d2   : > { %p1135_p0 = scmp.ne.s32.totalorder %s1133_s7, %s1134_s8  ;;  %p1139_p3 = scmp.lt.s32.totalorder %s1133_s7, %s1477_s3 }
 0x1d3   : > { %p1140_p4 = scmp.lt.s32.totalorder %s1138_s26, %s1134_s8 }
 0x1d4   : > { %p1136_p1 = pnand %p1135_p0, %p1294_p9 }
 0x1d5   : > { %p1141_p5 = por %p1140_p4, %p1139_p3 }
 0x1d6   : > { %p1137_p2 = pneg %p1136_p1 }
 0x1d8   : > { %p1142_p6 = pnand %p1141_p5, %p1137_p2 }
 0x239   : > { %v576_v28 = vpop.f32.mrf.mxu0 }
 0x23a   : > { %652 = vst.msk [vmem:[%s321_s17] sm:$0xff] %vm350_vm0, %v576_v28 }
 0x241   : > { %v599_v29 = vpop.f32.mrf.mxu1 }
 0x242   : > { %653 = vst.msk [vmem:[%s321_s17 + $0x8] sm:$0xff] %vm350_vm0, %v599_v29 }
 0x245   : > { %v622_v30 = vpop.f32.mrf.mxu2 }
 0x246   : > { %654 = vst.msk [vmem:[%s321_s17 + $0x10] sm:$0xff] %vm350_vm0, %v622_v30 }
 0x24d   : > { %v645_v31 = vpop.f32.mrf.mxu3 }
 0x24e   : > { %655 = vst.msk [vmem:[%s321_s17 + $0x18] sm:$0xff] %vm350_vm0, %v645_v31 }
 0x24f   : > { %1145 = shalt.err (!%p1142_p6)
}
 0x250   : > { %909 = dma.vmem_to_hbm [thread:$0]  (%p1294_p9), %s676_s27, 512, %s678_s6, %s657_s19, %s1212_s5, %s1212_s5, %s1213_s29  }
 0x251 PF: > { %s1500_s10 = sld [smem:[#allocation17_spill]]  ;;  %s710_s11 = sand.u32 1, %s1188_s15  }
 0x252   : > { %p924_p7 = pnand %p862_p12, %p1301_p11  ;;  %s711_s12 = scalar_lea.sflag [#allocation4], %s710_s11 }
 0x254   : > { %p925_p8 = pneg %p924_p7 }
 0x256   : > { %1179 = dma.done.wait (%p925_p8), %s711_s12, 512  }
 0x257   : > { %1181 = vsyncadd (%p925_p8), %s711_s12, 4294966784  ;;  %s721_s14 = scalar_lea.sflag [#allocation10], %s710_s11 }
 0x258   : > { %1183 = dma.done.wait (%p925_p8), %s721_s14, 512  }
 0x259   : > { %1185 = vsyncadd (%p925_p8), %s721_s14, 4294966784  ;;  %s27_s20 = sadd.s32 1, %s1500_s10   ;;  %s1501_s28 = sld [smem:[#allocation15_spill]] }
 0x25a   : > { %p24_p10 = scmp.ge.s32.totalorder %s27_s20, 4   ;;  %s1502_s17 = sld [smem:[#allocation19_spill]] }
 0x25b   : > { %s1503_s18 = sld [smem:[#allocation16_spill]]  ;;  %s1505_s15 = smov %s1192_s16 }
 0x25c   : > { %s1504_s19 = sld [smem:[#allocation18_spill]]  ;;  %26 = sbr.rel (!%p24_p10) target bundleno = 12 (0xc), region = 118 }
 0x25f   : > { %s1506_s16 = smov %s1501_s28 }
 0x261   :  { %727 = vsyncpa [#allocation3], 1 }
 0x262   :  { %729 = vsyncpa [#allocation3 + $0x1], 1 }
 0x263   :  { %730 = vsyncpa [#allocation6], 1 }
 0x264   :  { %732 = vsyncpa [#allocation6 + $0x1], 1 }
 0x265   :  { %733 = vsyncpa [#allocation4], 1 }
 0x266   :  { %735 = vsyncpa [#allocation4 + $0x1], 1 }
 0x267   :  { %736 = vsyncpa [#allocation10], 1 }
 0x268   :  { %738 = vsyncpa [#allocation10 + $0x1], 1 }

</bundles_post_ra>
